<compile_context>
chip_gen: v7x
topology: tpu7x:2x2x1
jax: 0.10.0
libtpu: 0.0.40
codegen_flags: <defaults>
</compile_context>

<pallas_src>
from functools import partial

import jax
import jax.numpy as jnp
from jax.experimental import pallas as pl
from jax.experimental.pallas import tpu as pltpu

_VMEM_LIMIT_BYTES = 48 * 1024 * 1024  # safe on v5e/v6e (128 MiB) and v7x (64 MiB)


def make_divisible(v, divisor=8, min_val=None):
    if min_val is None:
        min_val = divisor
    new_v = max(min_val, int(v + divisor / 2) // divisor * divisor)
    if new_v < 0.9 * v:
        new_v += divisor
    return new_v


def _pick_row_tile(m, pref):
    """Largest multiple-of-8 tile <= pref that divides m, else the full extent."""
    if m <= pref:
        return m
    for t in range(pref - pref % 8, 7, -8):
        if m % t == 0:
            return t
    return m


# ----------------------------------------------------------------------------
# Kernel 1: 1x1 conv as a row-tiled matmul, with fused (previous-layer BN affine
# + ReLU) on the input and per-tile (sum, sum_sq) stats of the output.
# ----------------------------------------------------------------------------
def _mm_bn_stats_kernel(*refs, apply_pre):
    if apply_pre:
        x_ref, scale_ref, shift_ref, w_ref, y_ref, stats_ref = refs
    else:
        x_ref, w_ref, y_ref, stats_ref = refs
    x = x_ref[...].astype(jnp.float32)
    if apply_pre:  # previous layer's BN affine + ReLU fused into this input
        x = jnp.maximum(x * scale_ref[...] + shift_ref[...], 0.0)
    y = jnp.dot(x, w_ref[...].astype(jnp.float32),
                preferred_element_type=jnp.float32)
    y_ref[...] = y.astype(y_ref.dtype)
    s = jnp.sum(y, axis=0, keepdims=True)        # (1, Cout) per-lane reduce
    q = jnp.sum(y * y, axis=0, keepdims=True)
    stats_ref[0] = jnp.concatenate([s, q], axis=0)


def _conv1x1_bn_stats(x2d, w, scale=None, shift=None, *, block_m, out_dtype):
    m, cin = x2d.shape
    cout = w.shape[1]
    tm = _pick_row_tile(m, block_m)
    grid = (m // tm,)
    apply_pre = scale is not None

    in_specs = [pl.BlockSpec((tm, cin), lambda i: (i, 0))]
    args = [x2d]
    if apply_pre:
        in_specs += [pl.BlockSpec((1, cin), lambda i: (0, 0)),
                     pl.BlockSpec((1, cin), lambda i: (0, 0))]
        args += [scale.reshape(1, cin).astype(jnp.float32),
                 shift.reshape(1, cin).astype(jnp.float32)]
    in_specs += [pl.BlockSpec((cin, cout), lambda i: (0, 0))]
    args += [w]

    y, stats = pl.pallas_call(
        partial(_mm_bn_stats_kernel, apply_pre=apply_pre),
        out_shape=(jax.ShapeDtypeStruct((m, cout), out_dtype),
                   jax.ShapeDtypeStruct((grid[0], 2, cout), jnp.float32)),
        grid=grid,
        in_specs=in_specs,
        out_specs=(pl.BlockSpec((tm, cout), lambda i: (i, 0)),
                   pl.BlockSpec((1, 2, cout), lambda i: (i, 0, 0))),
        compiler_params=pltpu.CompilerParams(
            dimension_semantics=("parallel",),
            vmem_limit_bytes=_VMEM_LIMIT_BYTES),
    )(*args)
    return y, jnp.sum(stats[:, 0, :], axis=0), jnp.sum(stats[:, 1, :], axis=0)


# ----------------------------------------------------------------------------
# Kernel 2: 3x3 "same" conv (stride 1) as 9 shifted MXU matmuls per image, with
# fused BN1 affine + ReLU on the input and per-image (sum, sum_sq) output stats.
# ----------------------------------------------------------------------------
def _conv3x3_bn_stats_kernel(x_ref, scale_ref, shift_ref, w_ref, y_ref, stats_ref,
                             *, h, w, cin, cout):
    a = x_ref[0].astype(jnp.float32)                           # (h, w, cin)
    a = jnp.maximum(a * scale_ref[...] + shift_ref[...], 0.0)  # BN affine + ReLU
    # zero 'same' padding built in VMEM (applied post-activation, as in PyTorch)
    zc = jnp.zeros((h, 1, cin), jnp.float32)
    a = jnp.concatenate([zc, a, zc], axis=1)                   # (h, w+2, cin)
    zr = jnp.zeros((1, w + 2, cin), jnp.float32)
    a = jnp.concatenate([zr, a, zr], axis=0)                   # (h+2, w+2, cin)
    acc = jnp.zeros((h * w, cout), jnp.float32)
    for dh in range(3):
        for dw in range(3):
            patch = a[dh:dh + h, dw:dw + w, :].reshape(h * w, cin)
            acc = acc + jnp.dot(patch, w_ref[dh * 3 + dw].astype(jnp.float32),
                                preferred_element_type=jnp.float32)
    y_ref[0] = acc.reshape(h, w, cout).astype(y_ref.dtype)
    s = jnp.sum(acc, axis=0, keepdims=True)
    q = jnp.sum(acc * acc, axis=0, keepdims=True)
    stats_ref[0] = jnp.concatenate([s, q], axis=0)


def _conv3x3_bn_stats(x4d, w9, scale, shift, *, out_dtype):
    n, h, w, cin = x4d.shape
    cout = w9.shape[-1]
    y, stats = pl.pallas_call(
        partial(_conv3x3_bn_stats_kernel, h=h, w=w, cin=cin, cout=cout),
        out_shape=(jax.ShapeDtypeStruct((n, h, w, cout), out_dtype),
                   jax.ShapeDtypeStruct((n, 2, cout), jnp.float32)),
        grid=(n,),
        in_specs=[pl.BlockSpec((1, h, w, cin), lambda i: (i, 0, 0, 0)),
                  pl.BlockSpec((1, cin), lambda i: (0, 0)),
                  pl.BlockSpec((1, cin), lambda i: (0, 0)),
                  pl.BlockSpec((9, cin, cout), lambda i: (0, 0, 0))],
        out_specs=(pl.BlockSpec((1, h, w, cout), lambda i: (i, 0, 0, 0)),
                   pl.BlockSpec((1, 2, cout), lambda i: (i, 0, 0))),
        compiler_params=pltpu.CompilerParams(
            dimension_semantics=("parallel",),
            vmem_limit_bytes=_VMEM_LIMIT_BYTES),
    )(x4d, scale.reshape(1, cin).astype(jnp.float32),
      shift.reshape(1, cin).astype(jnp.float32), w9)
    return y, jnp.sum(stats[:, 0, :], axis=0), jnp.sum(stats[:, 1, :], axis=0)


# ----------------------------------------------------------------------------
# Kernel 3: final BN3 affine + identity residual add + ReLU (row-tiled, lane-dense)
# ----------------------------------------------------------------------------
def _residual_bn_relu_kernel(y_ref, r_ref, scale_ref, shift_ref, o_ref):
    y = y_ref[...].astype(jnp.float32)
    r = r_ref[...].astype(jnp.float32)
    o = jnp.maximum(y * scale_ref[...] + shift_ref[...] + r, 0.0)
    o_ref[...] = o.astype(o_ref.dtype)


def _residual_bn_relu(y2d, res2d, scale, shift, *, block_m, out_dtype):
    m, c = y2d.shape
    tm = _pick_row_tile(m, block_m)
    return pl.pallas_call(
        _residual_bn_relu_kernel,
        out_shape=jax.ShapeDtypeStruct((m, c), out_dtype),
        grid=(m // tm,),
        in_specs=[pl.BlockSpec((tm, c), lambda i: (i, 0)),
                  pl.BlockSpec((tm, c), lambda i: (i, 0)),
                  pl.BlockSpec((1, c), lambda i: (0, 0)),
                  pl.BlockSpec((1, c), lambda i: (0, 0))],
        out_specs=pl.BlockSpec((tm, c), lambda i: (i, 0)),
        compiler_params=pltpu.CompilerParams(
            dimension_semantics=("parallel",),
            vmem_limit_bytes=_VMEM_LIMIT_BYTES),
    )(y2d, res2d, scale.reshape(1, c).astype(jnp.float32),
      shift.reshape(1, c).astype(jnp.float32))


def _bn_scale_shift(s, q, count, gamma, beta, eps):
    # Training-mode BN finalize: biased variance from (sum, sum_sq); tiny XLA op.
    mean = s / count
    var = jnp.maximum(q / count - mean * mean, 0.0)
    inv = jax.lax.rsqrt(var + eps)
    scale = gamma.astype(jnp.float32) * inv
    shift = beta.astype(jnp.float32) - mean * scale
    return scale, shift


# ----------------------------------------------------------------------------
# Full block forward
# ----------------------------------------------------------------------------
def dynamic_resnet_bottleneck_block(x_nchw, params, *, active_out_channel,
                                    active_expand_ratio, kernel_size=3, stride=1,
                                    eps=1e-5, block_m=512):
    if kernel_size != 3 or stride != 1:
        # TODO(synk): stride>1 and the 'conv'/'avgpool_conv' downsample branches are
        # not implemented; only the identity-downsample (stride=1, in==out) path is.
        raise NotImplementedError("only kernel_size=3, stride=1 identity-downsample path")

    n, cin, h, w = x_nchw.shape
    mid = make_divisible(round(active_out_channel * active_expand_ratio))
    cout = active_out_channel
    assert cin == cout, "identity residual requires in_channels == active_out_channel"
    dtype = x_nchw.dtype
    m = n * h * w
    count = float(m)

    # dynamic-channel slicing of conv filters / BN affine params
    w1 = jnp.transpose(params["w1"][:mid, :cin, 0, 0], (1, 0)).astype(dtype)   # (cin, mid)
    w2 = jnp.transpose(params["w2"][:mid, :mid, :, :], (2, 3, 1, 0))           # (3,3,mid,mid)
    w2 = w2.reshape(9, mid, mid).astype(dtype)
    w3 = jnp.transpose(params["w3"][:cout, :mid, 0, 0], (1, 0)).astype(dtype)  # (mid, cout)
    g1, b1 = params["bn1_w"][:mid], params["bn1_b"][:mid]
    g2, b2 = params["bn2_w"][:mid], params["bn2_b"][:mid]
    g3, b3 = params["bn3_w"][:cout], params["bn3_b"][:cout]

    # single NCHW -> NHWC conversion; everything below stays channels-on-lanes
    x_nhwc = jnp.transpose(x_nchw, (0, 2, 3, 1))
    x2d = x_nhwc.reshape(m, cin)

    # conv1 (1x1) + BN1 batch stats
    y1, s1, q1 = _conv1x1_bn_stats(x2d, w1, block_m=block_m, out_dtype=dtype)
    sc1, sh1 = _bn_scale_shift(s1, q1, count, g1, b1, eps)

    # [BN1 affine + ReLU] fused into conv2 (3x3 'same') + BN2 batch stats
    # TODO(synk): one full image per grid step; an H-tiled halo variant would be
    # needed for very large spatial extents.
    y2, s2, q2 = _conv3x3_bn_stats(y1.reshape(n, h, w, mid), w2, sc1, sh1, out_dtype=dtype)
    sc2, sh2 = _bn_scale_shift(s2, q2, count, g2, b2, eps)

    # [BN2 affine + ReLU] fused into conv3 (1x1) + BN3 batch stats
    y3, s3, q3 = _conv1x1_bn_stats(y2.reshape(m, mid), w3, scale=sc2, shift=sh2,
                                   block_m=block_m, out_dtype=dtype)
    sc3, sh3 = _bn_scale_shift(s3, q3, count, g3, b3, eps)

    # BN3 affine + identity residual + final ReLU
    out2d = _residual_bn_relu(y3, x2d, sc3, sh3, block_m=block_m, out_dtype=dtype)

    # NHWC -> NCHW once at the block boundary
    return jnp.transpose(out2d.reshape(n, h, w, cout), (0, 3, 1, 2))


# ----------------------------------------------------------------------------
# Pure-JAX reference (mirrors the PyTorch forward in training mode)
# ----------------------------------------------------------------------------
def _ref_block(x, params, active_out_channel, active_expand_ratio, eps=1e-5):
    _, cin, _, _ = x.shape
    mid = make_divisible(round(active_out_channel * active_expand_ratio))
    cout = active_out_channel

    def conv(v, wt, padding):
        return jax.lax.conv_general_dilated(
            v, wt, (1, 1), padding, dimension_numbers=("NCHW", "OIHW", "NCHW"))

    def bn(v, g, b):
        mean = jnp.mean(v, axis=(0, 2, 3), keepdims=True)
        var = jnp.mean((v - mean) ** 2, axis=(0, 2, 3), keepdims=True)
        return (v - mean) * jax.lax.rsqrt(var + eps) * g.reshape(1, -1, 1, 1) \
            + b.reshape(1, -1, 1, 1)

    relu = lambda v: jnp.maximum(v, 0.0)
    res = x
    hid = relu(bn(conv(x, params["w1"][:mid, :cin], "VALID"),
                  params["bn1_w"][:mid], params["bn1_b"][:mid]))
    hid = relu(bn(conv(hid, params["w2"][:mid, :mid], [(1, 1), (1, 1)]),
                  params["bn2_w"][:mid], params["bn2_b"][:mid]))
    hid = bn(conv(hid, params["w3"][:cout, :mid], "VALID"),
             params["bn3_w"][:cout], params["bn3_b"][:cout])
    return relu(hid + res)


if __name__ == "__main__":
    key = jax.random.PRNGKey(0)
    ks = jax.random.split(key, 10)

    N, H, W = 2, 16, 16
    in_ch = out_ch = 32                                  # identity downsample path
    expand_list = [0.25, 0.35]
    max_mid = make_divisible(round(out_ch * max(expand_list)))   # 16 (max width)
    active_expand = 0.25                                          # active mid = 8 < 16

    x = jax.random.normal(ks[0], (N, in_ch, H, W), dtype=jnp.float32)
    params = {
        "w1": 0.2 * jax.random.normal(ks[1], (max_mid, in_ch, 1, 1), jnp.float32),
        "w2": 0.2 * jax.random.normal(ks[2], (max_mid, max_mid, 3, 3), jnp.float32),
        "w3": 0.2 * jax.random.normal(ks[3], (out_ch, max_mid, 1, 1), jnp.float32),
        "bn1_w": 1.0 + 0.1 * jax.random.normal(ks[4], (max_mid,), jnp.float32),
        "bn1_b": 0.1 * jax.random.normal(ks[5], (max_mid,), jnp.float32),
        "bn2_w": 1.0 + 0.1 * jax.random.normal(ks[6], (max_mid,), jnp.float32),
        "bn2_b": 0.1 * jax.random.normal(ks[7], (max_mid,), jnp.float32),
        "bn3_w": 1.0 + 0.1 * jax.random.normal(ks[8], (out_ch,), jnp.float32),
        "bn3_b": 0.1 * jax.random.normal(ks[9], (out_ch,), jnp.float32),
    }

    y = dynamic_resnet_bottleneck_block(
        x, params, active_out_channel=out_ch, active_expand_ratio=active_expand,
        block_m=256)  # block_m=256 -> 2 row tiles at this shape (exercises tiling)
    y = jax.block_until_ready(y)

    ref = _ref_block(x, params, out_ch, active_expand)
    assert y.shape == ref.shape, (y.shape, ref.shape)
    err = float(jnp.max(jnp.abs(y - ref)))
    assert jnp.allclose(y, ref, atol=2e-3, rtol=2e-3), f"mismatch vs reference (max abs err {err})"

    print("KERNEL_OK")
</pallas_src>

<mosaic_0001>
module attributes {stable_mosaic.version = 11 : i64} {
  func.func @_mm_bn_stats_kernel(%arg0: i32, %arg1: memref<256x32xf32, #tpu.memory_space<vmem>>, %arg2: memref<32x8xf32, #tpu.memory_space<vmem>>, %arg3: memref<256x8xf32, #tpu.memory_space<vmem>>, %arg4: memref<1x2x8xf32, #tpu.memory_space<vmem>>) attributes {dimension_semantics = [#tpu.dimension_semantics<parallel>], iteration_bounds = array<i64: 2>, scalar_prefetch = 0 : i64, scratch_operands = 0 : i64, tpu.core_type = #tpu.core_type<tc>, window_params = [{transform_indices = @transform_0, window_bounds = array<i64: 256, 32>}, {pipeline_mode = #tpu.pipeline_mode<synchronous>, transform_indices = @transform_1, window_bounds = array<i64: 32, 8>}, {transform_indices = @transform_2, window_bounds = array<i64: 256, 8>}, {transform_indices = @transform_3, window_bounds = array<i64: 1, 2, 8>}]} {
    %c0 = arith.constant 0 : index
    %c0_0 = arith.constant 0 : index
    %0 = vector.load %arg1[%c0, %c0_0] : memref<256x32xf32, #tpu.memory_space<vmem>>, vector<256x32xf32>
    %c0_1 = arith.constant 0 : index
    %c0_2 = arith.constant 0 : index
    %1 = vector.load %arg2[%c0_1, %c0_2] : memref<32x8xf32, #tpu.memory_space<vmem>>, vector<32x8xf32>
    %cst = arith.constant dense<0.000000e+00> : vector<256x8xf32>
    %2 = tpu.matmul %0, %1, %cst {dimension_numbers = #tpu.dot_dimension_numbers<[1], [0], [0], [1], [0, 0, 1, 1], [], []>} : vector<256x32xf32>, vector<32x8xf32>, vector<256x8xf32> -> vector<256x8xf32>
    %c0_3 = arith.constant 0 : index
    %c0_4 = arith.constant 0 : index
    %3 = vector.load %arg3[%c0_3, %c0_4] : memref<256x8xf32, #tpu.memory_space<vmem>>, vector<256x8xf32>
    tpu.vector_store %arg3[%c0_3, %c0_4], %2 {strides = array<i32>} : memref<256x8xf32, #tpu.memory_space<vmem>>, vector<256x8xf32>,
    %cst_5 = arith.constant dense<0.000000e+00> : vector<8xf32>
    %4 = vector.multi_reduction <add>, %2, %cst_5 [0] : vector<256x8xf32> to vector<8xf32>
    %5 = vector.shape_cast %4 : vector<8xf32> to vector<1x8xf32>
    %6 = arith.mulf %2, %2 : vector<256x8xf32>
    %cst_6 = arith.constant dense<0.000000e+00> : vector<8xf32>
    %7 = vector.multi_reduction <add>, %6, %cst_6 [0] : vector<256x8xf32> to vector<8xf32>
    %8 = vector.shape_cast %7 : vector<8xf32> to vector<1x8xf32>
    %9 = tpu.concatenate %5, %8 in 0 : vector<1x8xf32>, vector<1x8xf32> -> vector<2x8xf32>
    %c0_7 = arith.constant 0 : index
    %c0_8 = arith.constant 0 : index
    %c0_9 = arith.constant 0 : index
    %10 = vector.load %arg4[%c0_7, %c0_8, %c0_9] : memref<1x2x8xf32, #tpu.memory_space<vmem>>, vector<1x2x8xf32>
    %11 = vector.shape_cast %10 : vector<1x2x8xf32> to vector<2x8xf32>
    %12 = vector.shape_cast %9 : vector<2x8xf32> to vector<1x2x8xf32>
    tpu.vector_store %arg4[%c0_7, %c0_8, %c0_9], %12 {strides = array<i32>} : memref<1x2x8xf32, #tpu.memory_space<vmem>>, vector<1x2x8xf32>,
    return
  }
  func.func @transform_0(%arg0: i32) -> (i32, i32) {
    %c0_i32 = arith.constant 0 : i32
    %c0_i32_0 = arith.constant 0 : i32
    return %arg0, %c0_i32 : i32, i32
  }
  func.func @transform_1(%arg0: i32) -> (i32, i32) {
    %c0_i32 = arith.constant 0 : i32
    %c0_i32_0 = arith.constant 0 : i32
    %c0_i32_1 = arith.constant 0 : i32
    return %c0_i32, %c0_i32_0 : i32, i32
  }
  func.func @transform_2(%arg0: i32) -> (i32, i32) {
    %c0_i32 = arith.constant 0 : i32
    %c0_i32_0 = arith.constant 0 : i32
    return %arg0, %c0_i32 : i32, i32
  }
  func.func @transform_3(%arg0: i32) -> (i32, i32, i32) {
    %c0_i32 = arith.constant 0 : i32
    %c0_i32_0 = arith.constant 0 : i32
    %c0_i32_1 = arith.constant 0 : i32
    return %arg0, %c0_i32, %c0_i32_0 : i32, i32, i32
  }
}

</mosaic_0001>

<bundles_post_ra>
// kernel: tpu_custom_call.1
= control target key start
LH: loop header
LB: loop body
LE: loop exit
PB: predicated region body
PF: predicated region fallthrough
CT: control target
= control target key end

     0   :  { %9 = vsyncpa [#allocation3], 0  ;;  %s1543_s0 = inlined_call_operand.vmem [shape: f32[512,32], index: 0, kind: input, shape index: {}]   ;;  %s1544_s1 = inlined_call_operand.vmem [shape: f32[32,8], index: 1, kind: input, shape index: {}]   ;;  %s1545_s2 = inlined_call_operand.vmem [shape: f32[512,8], index: 2, kind: output, shape index: {0}]   ;;  %s1546_s3 = inlined_call_operand.hbm [shape: f32[2,2,8], index: 3, kind: output, shape index: {1}]  }
   0x1   :  { %11 = vsyncpa [#allocation3 + $0x1], 0  ;;  %s1130_s12 = smov 0   ;;  %s1132_s13 = smov 0  }
   0x2   :  { %s1134_s14 = smov 0   ;;  %s1136_s15 = smov 0  }
   0x3 LB: > { %s856_s16 = sadd.s32 4294967295, %s1107_s15   ;;  %s857_s17 = sadd.s32 4294967294, %s1107_s15   ;;  %s1107_s15 = sphi %s1136_s15, %s1552_s15   ;;  %s1103_s14 = sphi %s1134_s14, %s1551_s14   ;;  %s1099_s13 = sphi %s1132_s13, %s1550_s13   ;;  %s1095_s12 = sphi %s1130_s12, %s1549_s12  }
   0x4   : > { %s1153_s18 = sadd.s32 1, %s1107_s15   ;;  %s97_s19 = sadd.s32 1, %s1103_s14 }
   0x5   : > { %s94_s20 = ssub.s32 %s1107_s15, %s1153_s18  ;;  %p107_p0 = scmp.ne.s32.totalorder %s1103_s14, %s1099_s13 }
   0x6   : > { %p95_p1 = scmp.eq.s32.totalorder %s94_s20, 0  ;;  %p108_p2 = scmp.eq.s32.totalorder %s856_s16, 1 }
   0x7   : > { %p113_p3 = scmp.ne.s32.totalorder %s1099_s13, %s1095_s12  ;;  %p114_p4 = scmp.eq.s32.totalorder %s857_s17, 1 }
   0x8   : > { %s1163_s21 = scalar_select %p95_p1, %s1103_s14, %s97_s19  }
   0x9   : > { %p1165_p5 = por %p108_p2, %p107_p0  ;;  %p1169_p6 = por %p114_p4, %p113_p3 }
   0xa   : > { %p860_p7 = scmp.ge.s32.totalorder %s1107_s15, 1  ;;  %p144_p8 = scmp.lt.s32.totalorder %s1107_s15, 3 }
   0xc   : > { %p145_p9 = pnand %p860_p7, %p144_p8 }
   0xd   : > { %v217_v0 = vld [vmem:[%s1544_s1] sm:$0xff] (!%p145_p9)  ;;  %v218_v1 = vld [vmem:[%s1544_s1 + $0x8] sm:$0xff] (!%p145_p9)  ;;  %v219_v2 = vld [vmem:[%s1544_s1 + $0x10] sm:$0xff] (!%p145_p9)  ;;  %s1184_s30 = sshll.u32 (!%p145_p9), %s856_s16, 5  ;;  %vm221_vm0 = vcmask (!%p145_p9), 261120   ;;  %vm543_vm1 = vcmask (!%p145_p9), 64512  }
   0xe   : > { %148 = sbr.rel (%p145_p9) target bundleno = 334 (0x14e), region = 28  ;;  %v994_v3 = vpack.c.bf16 (!%p145_p9), %v218_v1, %v217_v0  ;;  %v220_v4 = vld [vmem:[%s1544_s1 + $0x18] sm:$0xff] (!%p145_p9)  ;;  %p174_p10 = scmp.lt.s32.totalorder (!%p145_p9), %s1184_s30, 63  ;;  %vm746_vm2 = vcmask (!%p145_p9), 1040384   ;;  %vm748_vm3 = vcmask (!%p145_p9), 58368  }
   0xf   : > { %v998_v5 = vpack.c.bf16 (!%p145_p9), %v220_v4, %v219_v2  ;;  %s170_s19 = sand.u32 (!%p145_p9), 1, %s1099_s13   ;;  %s1501_s28 = scalar_lea.hbm (!%p145_p9), %s1546_s3, %s1184_s30 }
  0x10   : > { %995 = vmatprep.subr.bf16.mxu0 (!%p145_p9), %v994_v3  ;;  %1002 = vmatprep.subr.bf16.mxu1 (!%p145_p9), %v994_v3  ;;  %s861_s20 = sshll.u32 (!%p145_p9), %s170_s19, 1  ;;  %s756_s29 = scalar_lea.sflag (!%p145_p9), [#allocation3], %s170_s19 }
  0x11   : > { %997 = vmatpush3.bf16.msra.mxu0 (!%p145_p9), %v994_v3  ;;  %1004 = vmatpush3.bf16.msra.mxu1 (!%p145_p9), %v994_v3  ;;  %s172_s24 = scalar_lea.vmem (!%p145_p9), [#allocation2], %s861_s20  ;;  %s1109_s5 = smov (!%p145_p9), [#allocation2]  }
  0x12   : > { %999 = vmatprep.subr.bf16.mxu0 (!%p145_p9), %v998_v5  ;;  %1003 = vmatprep.subr.bf16.mxu1 (!%p145_p9), %v998_v5  ;;  %s773_s25 = sshll.u32 (!%p145_p9), %s172_s24, 4  ;;  %s1503_s25 = int_to_ptr.vmem [resolvable:$true] %s773_s25 }
  0x13   : > { %s1045_s4 = scalar_lea.vmem (!%p145_p9), %s1503_s25, 32 }
  0x14   : > { %p1046_p11 = scmp.ne.s32.totalorder (!%p145_p9), %s1503_s25, %s1045_s4 }
  0x15   : > { %s1191_s6 = scalar_select %p174_p10, %s1184_s30, 63  ;;  %1001 = vmatpush3.bf16.msra.mxu0 %v998_v5  ;;  %1005 = vmatpush3.bf16.msra.mxu1 %v998_v5 }
  0x16   : > { %p1047_p12 = pnand %p1046_p11, %p1165_p5 }
  0x17   : > { %s863_s7 = sshll.u32 %s1191_s6, 3  ;;  %s1049_s6 = sshll.u32 %s1109_s5, 4  ;;  %s1050_s6 = int_to_ptr.vmem [resolvable:$false] %s1049_s6 }
  0x18   : > { %s1199_s10 = scalar_lea.vmem %s1543_s0, %s863_s7  ;;  %s1270_s17 = scalar_lea.vmem %s1545_s2, %s863_s7 }
  0x19   : > { %v185_v6 = vld [vmem:[%s1199_s10] sm:$0xff]  ;;  %v186_v7 = vld [vmem:[%s1199_s10 + $0x8] sm:$0xff]  ;;  %v187_v8 = vld [vmem:[%s1199_s10 + $0x10] sm:$0xff]  ;;  %p1048_p13 = pneg %p1047_p12  ;;  %s1051_s7 = scalar_lea.vmem %s1050_s6, 64 }
  0x1a   : > { %946 = vmatprep.mubr.msk.f32.mxu0 %vm221_vm0, %v185_v6  ;;  %v188_v9 = vld [vmem:[%s1199_s10 + $0x18] sm:$0xff]  ;;  %v201_v10 = vld [vmem:[%s1199_s10 + $0x80] sm:$0xff]  ;;  %v202_v11 = vld [vmem:[%s1199_s10 + $0x88] sm:$0xff]  ;;  %p1052_p0 = scmp.lt.s32.totalorder %s1503_s25, %s1050_s6  ;;  %p1053_p1 = scmp.lt.s32.totalorder %s1051_s7, %s1045_s4 }
  0x1b   : > { %947 = vmatmul.mubr.msk.f32.vlgmr.msra.gmra.mrb[0].mxu0 %vm221_vm0, %v186_v7  ;;  %v189_v12 = vld [vmem:[%s1199_s10 + $0x20] sm:$0xff]  ;;  %970 = vmatprep.mubr.msk.f32.mxu1 %vm221_vm0, %v201_v10  ;;  %v203_v13 = vld [vmem:[%s1199_s10 + $0x90] sm:$0xff]  ;;  %v204_v14 = vld [vmem:[%s1199_s10 + $0x98] sm:$0xff] }
  0x1c   : > { %949 = vmatprep.mubr.msk.f32.mxu0 %vm221_vm0, %v187_v8  ;;  %971 = vmatmul.mubr.msk.f32.vlgmr.msra.gmra.mrb[0].mxu1 %vm221_vm0, %v202_v11  ;;  %v190_v15 = vld [vmem:[%s1199_s10 + $0x28] sm:$0xff]  ;;  %v205_v16 = vld [vmem:[%s1199_s10 + $0xa0] sm:$0xff]  ;;  %v191_v17 = vld [vmem:[%s1199_s10 + $0x30] sm:$0xff]  ;;  %p1054_p2 = por %p1053_p1, %p1052_p0 }
  0x1d   : > { %973 = vmatprep.mubr.msk.f32.mxu1 %vm221_vm0, %v203_v13  ;;  %v206_v18 = vld [vmem:[%s1199_s10 + $0xa8] sm:$0xff]  ;;  %v192_v19 = vld [vmem:[%s1199_s10 + $0x38] sm:$0xff]  ;;  %v207_v20 = vld [vmem:[%s1199_s10 + $0xb0] sm:$0xff] }
  0x1e   : > { %v193_v21 = vld [vmem:[%s1199_s10 + $0x40] sm:$0xff]  ;;  %v208_v22 = vld [vmem:[%s1199_s10 + $0xb8] sm:$0xff]  ;;  %v194_v23 = vld [vmem:[%s1199_s10 + $0x48] sm:$0xff]  ;;  %p1055_p3 = pnand %p1054_p2, %p1048_p13 }
  0x1f   : > { %950 = vmatmul.mubr.msk.f32.gmra.mrb[2].mxu0 %vm221_vm0, %v188_v9  ;;  %v209_v24 = vld [vmem:[%s1199_s10 + $0xc0] sm:$0xff]  ;;  %v195_v25 = vld [vmem:[%s1199_s10 + $0x50] sm:$0xff]  ;;  %v210_v26 = vld [vmem:[%s1199_s10 + $0xc8] sm:$0xff] }
  0x20   : > { %952 = vmatprep.mubr.msk.f32.mxu0 %vm221_vm0, %v189_v12  ;;  %974 = vmatmul.mubr.msk.f32.gmra.mrb[2].mxu1 %vm221_vm0, %v204_v14  ;;  %v196_v27 = vld [vmem:[%s1199_s10 + $0x58] sm:$0xff]  ;;  %v211_v28 = vld [vmem:[%s1199_s10 + $0xd0] sm:$0xff]  ;;  %v197_v29 = vld [vmem:[%s1199_s10 + $0x60] sm:$0xff] }
  0x21   : > { %976 = vmatprep.mubr.msk.f32.mxu1 %vm221_vm0, %v205_v16  ;;  %v212_v30 = vld [vmem:[%s1199_s10 + $0xd8] sm:$0xff]  ;;  %v198_v31 = vld [vmem:[%s1199_s10 + $0x68] sm:$0xff]  ;;  %v213_v32 = vld [vmem:[%s1199_s10 + $0xe0] sm:$0xff] }
  0x22   : > { %v199_v33 = vld [vmem:[%s1199_s10 + $0x70] sm:$0xff]  ;;  %v214_v34 = vld [vmem:[%s1199_s10 + $0xe8] sm:$0xff]  ;;  %v200_v35 = vld [vmem:[%s1199_s10 + $0x78] sm:$0xff] }
  0x23   : > { %953 = vmatmul.mubr.msk.f32.gmra.mrb[4].mxu0 %vm221_vm0, %v190_v15  ;;  %v215_v36 = vld [vmem:[%s1199_s10 + $0xf0] sm:$0xff]  ;;  %v216_v37 = vld [vmem:[%s1199_s10 + $0xf8] sm:$0xff] }
  0x24   : > { %955 = vmatprep.mubr.msk.f32.mxu0 %vm221_vm0, %v191_v17  ;;  %977 = vmatmul.mubr.msk.f32.gmra.mrb[4].mxu1 %vm221_vm0, %v206_v18 }
  0x25   : > { %979 = vmatprep.mubr.msk.f32.mxu1 %vm221_vm0, %v207_v20 }
  0x27   : > { %956 = vmatmul.mubr.msk.f32.gmra.mrb[6].mxu0 %vm221_vm0, %v192_v19 }
  0x28   : > { %958 = vmatprep.mubr.msk.f32.mxu0 %vm221_vm0, %v193_v21  ;;  %980 = vmatmul.mubr.msk.f32.gmra.mrb[6].mxu1 %vm221_vm0, %v208_v22 }
  0x29   : > { %982 = vmatprep.mubr.msk.f32.mxu1 %vm221_vm0, %v209_v24 }
  0x2b   : > { %959 = vmatmul.mubr.msk.f32.gmra.mrb[8].mxu0 %vm221_vm0, %v194_v23 }
  0x2c   : > { %961 = vmatprep.mubr.msk.f32.mxu0 %vm221_vm0, %v195_v25  ;;  %983 = vmatmul.mubr.msk.f32.gmra.mrb[8].mxu1 %vm221_vm0, %v210_v26 }
  0x2d   : > { %985 = vmatprep.mubr.msk.f32.mxu1 %vm221_vm0, %v211_v28 }
  0x2f   : > { %962 = vmatmul.mubr.msk.f32.gmra.mrb[10].mxu0 %vm221_vm0, %v196_v27 }
  0x30   : > { %964 = vmatprep.mubr.msk.f32.mxu0 %vm221_vm0, %v197_v29  ;;  %986 = vmatmul.mubr.msk.f32.gmra.mrb[10].mxu1 %vm221_vm0, %v212_v30 }
  0x31   : > { %988 = vmatprep.mubr.msk.f32.mxu1 %vm221_vm0, %v213_v32 }
  0x33   : > { %965 = vmatmul.mubr.msk.f32.gmra.mrb[12].mxu0 %vm221_vm0, %v198_v31 }
  0x34   : > { %967 = vmatprep.mubr.msk.f32.mxu0 %vm221_vm0, %v199_v33  ;;  %989 = vmatmul.mubr.msk.f32.gmra.mrb[12].mxu1 %vm221_vm0, %v214_v34 }
  0x35   : > { %991 = vmatprep.mubr.msk.f32.mxu1 %vm221_vm0, %v215_v36 }
  0x37   : > { %968 = vmatmul.mubr.msk.f32.gmra.mrb[14].mxu0 %vm221_vm0, %v200_v35 }
  0x38   : > { %992 = vmatmul.mubr.msk.f32.gmra.mrb[14].mxu1 %vm221_vm0, %v216_v37 }
  0xee   : > { %v948_v38 = vpop.f32.mrb[0].mxu0 }
  0xef   : > { %545 = vst.msk [vmem:[%s1270_s17 + $0x8] sm:$0xff] %vm543_vm1, %v948_v38  ;;  %v577_v39 = vsel %vm543_vm1, %v948_v38, 0.0  ;;  %v646_v40 = vmul.f32 %v948_v38, %v948_v38  ;;  %v384_v41 = vpop.f32.mrb[1].mxu0  ;;  %v1279_v46 = vpop.f32.mrb[0].mxu1 }
  0xf0   : > { %544 = vst.msk [vmem:[%s1270_s17] sm:$0xff] %vm543_vm1, %v384_v41  ;;  %v576_v42 = vsel %vm543_vm1, %v384_v41, 0.0  ;;  %v645_v43 = vmul.f32 %v384_v41, %v384_v41  ;;  %561 = vst.msk [vmem:[%s1270_s17 + $0x88] sm:$0xff] %vm543_vm1, %v1279_v46  ;;  %v1285_v49 = vpop.f32.mrb[1].mxu1 }
  0xf1   : > { %v678_v44 = vsel %vm543_vm1, %v646_v40, 0.0  ;;  %v578_v45 = vadd.f32 %v577_v39, %v576_v42  ;;  %560 = vst.msk [vmem:[%s1270_s17 + $0x80] sm:$0xff] %vm543_vm1, %v1285_v49 }
  0xf2   : > { %v677_v47 = vsel %vm543_vm1, %v645_v43, 0.0  ;;  %v951_v48 = vpop.f32.mrb[2].mxu0 }
  0xf3   : > { %v679_v50 = vadd.f32 %v678_v44, %v677_v47  ;;  %547 = vst.msk [vmem:[%s1270_s17 + $0x18] sm:$0xff] %vm543_vm1, %v951_v48  ;;  %v394_v51 = vpop.f32.mrb[3].mxu0  ;;  %v648_v52 = vmul.f32 %v951_v48, %v951_v48  ;;  %v1295_v56 = vpop.f32.mrb[2].mxu1  ;;  %v581_v57 = vsel %vm543_vm1, %v951_v48, 0.0 }
  0xf4   : > { %546 = vst.msk [vmem:[%s1270_s17 + $0x10] sm:$0xff] %vm543_vm1, %v394_v51  ;;  %v579_v53 = vsel %vm543_vm1, %v394_v51, 0.0  ;;  %v647_v54 = vmul.f32 %v394_v51, %v394_v51  ;;  %563 = vst.msk [vmem:[%s1270_s17 + $0x98] sm:$0xff] %vm543_vm1, %v1295_v56  ;;  %v1302_v60 = vpop.f32.mrb[3].mxu1 }
  0xf5   : > { %v580_v55 = vadd.f32 %v579_v53, %v578_v45  ;;  %562 = vst.msk [vmem:[%s1270_s17 + $0x90] sm:$0xff] %vm543_vm1, %v1302_v60  ;;  %v682_v0 = vsel %vm543_vm1, %v648_v52, 0.0 }
  0xf6   : > { %v680_v58 = vsel %vm543_vm1, %v647_v54, 0.0  ;;  %v954_v59 = vpop.f32.mrb[4].mxu0 }
  0xf7   : > { %v681_v61 = vadd.f32 %v680_v58, %v679_v50  ;;  %549 = vst.msk [vmem:[%s1270_s17 + $0x28] sm:$0xff] %vm543_vm1, %v954_v59  ;;  %v404_v62 = vpop.f32.mrb[5].mxu0  ;;  %v582_v63 = vadd.f32 %v581_v57, %v580_v55  ;;  %v650_v1 = vmul.f32 %v954_v59, %v954_v59  ;;  %v1313_v6 = vpop.f32.mrb[4].mxu1  ;;  %v585_v7 = vsel %vm543_vm1, %v954_v59, 0.0 }
  0xf8   : > { %548 = vst.msk [vmem:[%s1270_s17 + $0x20] sm:$0xff] %vm543_vm1, %v404_v62  ;;  %v583_v2 = vsel %vm543_vm1, %v404_v62, 0.0  ;;  %v649_v3 = vmul.f32 %v404_v62, %v404_v62  ;;  %565 = vst.msk [vmem:[%s1270_s17 + $0xa8] sm:$0xff] %vm543_vm1, %v1313_v6  ;;  %v1320_v10 = vpop.f32.mrb[5].mxu1 }
  0xf9   : > { %v584_v4 = vadd.f32 %v583_v2, %v582_v63  ;;  %v683_v5 = vadd.f32 %v682_v0, %v681_v61  ;;  %564 = vst.msk [vmem:[%s1270_s17 + $0xa0] sm:$0xff] %vm543_vm1, %v1320_v10  ;;  %v686_v14 = vsel %vm543_vm1, %v650_v1, 0.0 }
  0xfa   : > { %v684_v8 = vsel %vm543_vm1, %v649_v3, 0.0  ;;  %v957_v9 = vpop.f32.mrb[6].mxu0 }
  0xfb   : > { %v685_v11 = vadd.f32 %v684_v8, %v683_v5  ;;  %551 = vst.msk [vmem:[%s1270_s17 + $0x38] sm:$0xff] %vm543_vm1, %v957_v9  ;;  %v414_v12 = vpop.f32.mrb[7].mxu0  ;;  %v586_v13 = vadd.f32 %v585_v7, %v584_v4  ;;  %v652_v15 = vmul.f32 %v957_v9, %v957_v9  ;;  %v1331_v20 = vpop.f32.mrb[6].mxu1  ;;  %v589_v21 = vsel %vm543_vm1, %v957_v9, 0.0 }
  0xfc   : > { %550 = vst.msk [vmem:[%s1270_s17 + $0x30] sm:$0xff] %vm543_vm1, %v414_v12  ;;  %v587_v16 = vsel %vm543_vm1, %v414_v12, 0.0  ;;  %v651_v17 = vmul.f32 %v414_v12, %v414_v12  ;;  %567 = vst.msk [vmem:[%s1270_s17 + $0xb8] sm:$0xff] %vm543_vm1, %v1331_v20  ;;  %v1338_v24 = vpop.f32.mrb[7].mxu1  ;;  %v661_v12 = vmul.f32 %v1285_v49, %v1285_v49 }
  0xfd   : > { %v588_v18 = vadd.f32 %v587_v16, %v586_v13  ;;  %v687_v19 = vadd.f32 %v686_v14, %v685_v11  ;;  %566 = vst.msk [vmem:[%s1270_s17 + $0xb0] sm:$0xff] %vm543_vm1, %v1338_v24  ;;  %v690_v28 = vsel %vm543_vm1, %v652_v15, 0.0 }
  0xfe   : > { %v688_v22 = vsel %vm543_vm1, %v651_v17, 0.0  ;;  %v960_v23 = vpop.f32.mrb[8].mxu0 }
  0xff   : > { %v689_v25 = vadd.f32 %v688_v22, %v687_v19  ;;  %553 = vst.msk [vmem:[%s1270_s17 + $0x48] sm:$0xff] %vm543_vm1, %v960_v23  ;;  %v424_v26 = vpop.f32.mrb[9].mxu0  ;;  %v590_v27 = vadd.f32 %v589_v21, %v588_v18  ;;  %v654_v29 = vmul.f32 %v960_v23, %v960_v23  ;;  %v1349_v34 = vpop.f32.mrb[8].mxu1  ;;  %v593_v35 = vsel %vm543_vm1, %v960_v23, 0.0 }
 0x100   : > { %552 = vst.msk [vmem:[%s1270_s17 + $0x40] sm:$0xff] %vm543_vm1, %v424_v26  ;;  %v591_v30 = vsel %vm543_vm1, %v424_v26, 0.0  ;;  %v653_v31 = vmul.f32 %v424_v26, %v424_v26  ;;  %569 = vst.msk [vmem:[%s1270_s17 + $0xc8] sm:$0xff] %vm543_vm1, %v1349_v34  ;;  %v1356_v38 = vpop.f32.mrb[9].mxu1  ;;  %v607_v19 = vsel %vm543_vm1, %v1285_v49, 0.0 }
 0x101   : > { %v592_v32 = vadd.f32 %v591_v30, %v590_v27  ;;  %v691_v33 = vadd.f32 %v690_v28, %v689_v25  ;;  %568 = vst.msk [vmem:[%s1270_s17 + $0xc0] sm:$0xff] %vm543_vm1, %v1356_v38  ;;  %v694_v42 = vsel %vm543_vm1, %v654_v29, 0.0  ;;  %v662_v30 = vmul.f32 %v1279_v46, %v1279_v46 }
 0x102   : > { %v692_v36 = vsel %vm543_vm1, %v653_v31, 0.0  ;;  %v963_v37 = vpop.f32.mrb[10].mxu0  ;;  %v708_v31 = vsel %vm543_vm1, %v661_v12, 0.0 }
 0x103   : > { %v693_v39 = vadd.f32 %v692_v36, %v691_v33  ;;  %555 = vst.msk [vmem:[%s1270_s17 + $0x58] sm:$0xff] %vm543_vm1, %v963_v37  ;;  %v434_v40 = vpop.f32.mrb[11].mxu0  ;;  %v594_v41 = vadd.f32 %v593_v35, %v592_v32  ;;  %v656_v43 = vmul.f32 %v963_v37, %v963_v37  ;;  %v1367_v50 = vpop.f32.mrb[10].mxu1  ;;  %v597_v51 = vsel %vm543_vm1, %v963_v37, 0.0 }
 0x104   : > { %554 = vst.msk [vmem:[%s1270_s17 + $0x50] sm:$0xff] %vm543_vm1, %v434_v40  ;;  %v595_v44 = vsel %vm543_vm1, %v434_v40, 0.0  ;;  %v655_v45 = vmul.f32 %v434_v40, %v434_v40  ;;  %571 = vst.msk [vmem:[%s1270_s17 + $0xd8] sm:$0xff] %vm543_vm1, %v1367_v50  ;;  %v1374_v54 = vpop.f32.mrb[11].mxu1  ;;  %v663_v32 = vmul.f32 %v1302_v60, %v1302_v60  ;;  %v609_v37 = vsel %vm543_vm1, %v1279_v46, 0.0 }
 0x105   : > { %v596_v47 = vadd.f32 %v595_v44, %v594_v41  ;;  %v695_v48 = vadd.f32 %v694_v42, %v693_v39  ;;  %570 = vst.msk [vmem:[%s1270_s17 + $0xd0] sm:$0xff] %vm543_vm1, %v1374_v54  ;;  %v698_v59 = vsel %vm543_vm1, %v656_v43, 0.0  ;;  %v611_v39 = vsel %vm543_vm1, %v1302_v60, 0.0 }
 0x106   : > { %v696_v52 = vsel %vm543_vm1, %v655_v45, 0.0  ;;  %v966_v53 = vpop.f32.mrb[12].mxu0  ;;  %v710_v42 = vsel %vm543_vm1, %v662_v30, 0.0  ;;  %v664_v43 = vmul.f32 %v1295_v56, %v1295_v56  ;;  %v712_v44 = vsel %vm543_vm1, %v663_v32, 0.0 }
 0x107   : > { %v697_v55 = vadd.f32 %v696_v52, %v695_v48  ;;  %557 = vst.msk [vmem:[%s1270_s17 + $0x68] sm:$0xff] %vm543_vm1, %v966_v53  ;;  %v444_v57 = vpop.f32.mrb[13].mxu0  ;;  %v598_v58 = vadd.f32 %v597_v51, %v596_v47  ;;  %v658_v61 = vmul.f32 %v966_v53, %v966_v53  ;;  %v1385_v2 = vpop.f32.mrb[12].mxu1  ;;  %v601_v3 = vsel %vm543_vm1, %v966_v53, 0.0 }
 0x108   : > { %556 = vst.msk [vmem:[%s1270_s17 + $0x60] sm:$0xff] %vm543_vm1, %v444_v57  ;;  %v599_v62 = vsel %vm543_vm1, %v444_v57, 0.0  ;;  %v657_v63 = vmul.f32 %v444_v57, %v444_v57  ;;  %573 = vst.msk [vmem:[%s1270_s17 + $0xe8] sm:$0xff] %vm543_vm1, %v1385_v2  ;;  %v1392_v7 = vpop.f32.mrb[13].mxu1  ;;  %v665_v45 = vmul.f32 %v1320_v10, %v1320_v10  ;;  %v613_v46 = vsel %vm543_vm1, %v1295_v56, 0.0 }
 0x109   : > { %v600_v0 = vadd.f32 %v599_v62, %v598_v58  ;;  %v699_v1 = vadd.f32 %v698_v59, %v697_v55  ;;  %572 = vst.msk [vmem:[%s1270_s17 + $0xe0] sm:$0xff] %vm543_vm1, %v1392_v7  ;;  %v702_v13 = vsel %vm543_vm1, %v658_v61, 0.0  ;;  %v615_v60 = vsel %vm543_vm1, %v1320_v10, 0.0 }
 0x10a   : > { %v700_v4 = vsel %vm543_vm1, %v657_v63, 0.0  ;;  %v969_v5 = vpop.f32.mrb[14].mxu0  ;;  %v714_v53 = vsel %vm543_vm1, %v664_v43, 0.0  ;;  %v666_v55 = vmul.f32 %v1313_v6, %v1313_v6  ;;  %v716_v57 = vsel %vm543_vm1, %v665_v45, 0.0 }
 0x10b   : > { %v701_v8 = vadd.f32 %v700_v4, %v699_v1  ;;  %559 = vst.msk [vmem:[%s1270_s17 + $0x78] sm:$0xff] %vm543_vm1, %v969_v5  ;;  %v454_v9 = vpop.f32.mrb[15].mxu0  ;;  %v602_v11 = vadd.f32 %v601_v3, %v600_v0  ;;  %v660_v14 = vmul.f32 %v969_v5, %v969_v5  ;;  %v993_v21 = vpop.f32.mrb[14].mxu1  ;;  %v605_v22 = vsel %vm543_vm1, %v969_v5, 0.0 }
 0x10c   : > { %558 = vst.msk [vmem:[%s1270_s17 + $0x70] sm:$0xff] %vm543_vm1, %v454_v9  ;;  %v603_v15 = vsel %vm543_vm1, %v454_v9, 0.0  ;;  %v659_v16 = vmul.f32 %v454_v9, %v454_v9  ;;  %575 = vst.msk [vmem:[%s1270_s17 + $0xf8] sm:$0xff] %vm543_vm1, %v993_v21  ;;  %v1412_v25 = vsel %vm543_vm1, %v993_v21, 0.0  ;;  %v676_v26 = vmul.f32 %v993_v21, %v993_v21  ;;  %v1414_v27 = vpop.f32.mrb[15].mxu1 }
 0x10d   : > { %v604_v17 = vadd.f32 %v603_v15, %v602_v11  ;;  %v703_v18 = vadd.f32 %v702_v13, %v701_v8  ;;  %574 = vst.msk [vmem:[%s1270_s17 + $0xf0] sm:$0xff] %vm543_vm1, %v1414_v27  ;;  %v706_v49 = vsel %vm543_vm1, %v660_v14, 0.0  ;;  %v667_v58 = vmul.f32 %v1338_v24, %v1338_v24 }
 0x10e   : > { %v704_v23 = vsel %vm543_vm1, %v659_v16, 0.0  ;;  %v1426_v33 = vsel %vm543_vm1, %v676_v26, 0.0  ;;  %v617_v56 = vsel %vm543_vm1, %v1313_v6, 0.0  ;;  %v619_v10 = vsel %vm543_vm1, %v1338_v24, 0.0 }
 0x10f   : > { %v606_v28 = vadd.f32 %v605_v22, %v604_v17  ;;  %v705_v29 = vadd.f32 %v704_v23, %v703_v18  ;;  %v718_v0 = vsel %vm543_vm1, %v666_v55, 0.0  ;;  %v668_v1 = vmul.f32 %v1331_v20, %v1331_v20 }
 0x110   : > { %v720_v3 = vsel %vm543_vm1, %v667_v58, 0.0  ;;  %v669_v4 = vmul.f32 %v1356_v38, %v1356_v38  ;;  %v621_v6 = vsel %vm543_vm1, %v1331_v20, 0.0  ;;  %v623_v24 = vsel %vm543_vm1, %v1356_v38, 0.0 }
 0x111   : > { %v707_v35 = vadd.f32 %v706_v49, %v705_v29  ;;  %v608_v36 = vadd.f32 %v607_v19, %v606_v28  ;;  %v722_v12 = vsel %vm543_vm1, %v668_v1, 0.0  ;;  %v670_v13 = vmul.f32 %v1349_v34, %v1349_v34 }
 0x112   : > { %v724_v14 = vsel %vm543_vm1, %v669_v4, 0.0  ;;  %v671_v15 = vmul.f32 %v1374_v54, %v1374_v54  ;;  %v625_v20 = vsel %vm543_vm1, %v1349_v34, 0.0  ;;  %v627_v38 = vsel %vm543_vm1, %v1374_v54, 0.0 }
 0x113   : > { %v709_v40 = vadd.f32 %v708_v31, %v707_v35  ;;  %v610_v41 = vadd.f32 %v609_v37, %v608_v36  ;;  %v726_v21 = vsel %vm543_vm1, %v670_v13, 0.0  ;;  %v672_v22 = vmul.f32 %v1367_v50, %v1367_v50 }
 0x114   : > { %v728_v23 = vsel %vm543_vm1, %v671_v15, 0.0  ;;  %v673_v26 = vmul.f32 %v1392_v7, %v1392_v7  ;;  %v629_v34 = vsel %vm543_vm1, %v1367_v50, 0.0  ;;  %v631_v54 = vsel %vm543_vm1, %v1392_v7, 0.0 }
 0x115   : > { %v612_v47 = vadd.f32 %v611_v39, %v610_v41  ;;  %v711_v48 = vadd.f32 %v710_v42, %v709_v40  ;;  %v730_v31 = vsel %vm543_vm1, %v672_v22, 0.0  ;;  %v674_v32 = vmul.f32 %v1385_v2, %v1385_v2 }
 0x116   : > { %v732_v35 = vsel %vm543_vm1, %v673_v26, 0.0  ;;  %v675_v36 = vmul.f32 %v1414_v27, %v1414_v27  ;;  %v633_v50 = vsel %vm543_vm1, %v1385_v2, 0.0  ;;  %v635_v7 = vsel %vm543_vm1, %v1414_v27, 0.0 }
 0x117   : > { %v713_v51 = vadd.f32 %v712_v44, %v711_v48  ;;  %v614_v52 = vadd.f32 %v613_v46, %v612_v47  ;;  %v734_v42 = vsel %vm543_vm1, %v674_v32, 0.0 }
 0x118   : > { %v736_v43 = vsel %vm543_vm1, %v675_v36, 0.0 }
 0x119   : > { %v616_v59 = vadd.f32 %v615_v60, %v614_v52  ;;  %v715_v61 = vadd.f32 %v714_v53, %v713_v51 }
 0x11b   : > { %v717_v62 = vadd.f32 %v716_v57, %v715_v61  ;;  %v618_v63 = vadd.f32 %v617_v56, %v616_v59 }
 0x11d   : > { %v620_v5 = vadd.f32 %v619_v10, %v618_v63  ;;  %v719_v8 = vadd.f32 %v718_v0, %v717_v62 }
 0x11f   : > { %v721_v9 = vadd.f32 %v720_v3, %v719_v8  ;;  %v622_v11 = vadd.f32 %v621_v6, %v620_v5 }
 0x121   : > { %v624_v16 = vadd.f32 %v623_v24, %v622_v11  ;;  %v723_v17 = vadd.f32 %v722_v12, %v721_v9 }
 0x123   : > { %v725_v18 = vadd.f32 %v724_v14, %v723_v17  ;;  %v626_v19 = vadd.f32 %v625_v20, %v624_v16 }
 0x125   : > { %v628_v28 = vadd.f32 %v627_v38, %v626_v19  ;;  %v727_v29 = vadd.f32 %v726_v21, %v725_v18 }
 0x127   : > { %v729_v30 = vadd.f32 %v728_v23, %v727_v29  ;;  %v630_v49 = vadd.f32 %v629_v34, %v628_v28 }
 0x129   : > { %v632_v37 = vadd.f32 %v631_v54, %v630_v49  ;;  %v731_v39 = vadd.f32 %v730_v31, %v729_v30 }
 0x12b   : > { %v733_v40 = vadd.f32 %v732_v35, %v731_v39  ;;  %v634_v41 = vadd.f32 %v633_v50, %v632_v37 }
 0x12d   : > { %v636_v44 = vadd.f32 %v635_v7, %v634_v41  ;;  %v735_v45 = vadd.f32 %v734_v42, %v733_v40 }
 0x12f   : > { %v638_v47 = vadd.f32 %v1412_v25, %v636_v44  ;;  %v737_v48 = vadd.f32 %v736_v43, %v735_v45 }
 0x131   : > { %v639_v46 = vrot.slane %v638_v47, 4  ;;  %v739_v60 = vadd.f32 %v1426_v33, %v737_v48 }
 0x133   : > { %v640_v51 = vadd.f32 %v639_v46, %v638_v47  ;;  %v740_v2 = vrot.slane %v739_v60, 4 }
 0x135   : > { %v641_v52 = vrot.slane %v640_v51, 2  ;;  %v741_v27 = vadd.f32 %v740_v2, %v739_v60 }
 0x137   : > { %v642_v53 = vadd.f32 %v641_v52, %v640_v51  ;;  %v742_v55 = vrot.slane %v741_v27, 2 }
 0x139   : > { %v643_v57 = vrot.slane %v642_v53, 1  ;;  %v743_v58 = vadd.f32 %v742_v55, %v741_v27 }
 0x13b   : > { %v744_v59 = vrot.slane %v743_v58, 1  ;;  %v644_v25 = vadd.f32 %v643_v57, %v642_v53 }
 0x13d   : > { %v745_v61 = vadd.f32 %v744_v59, %v743_v58 }
 0x13f   : > { %v747_v33 = vsel %vm746_vm2, %v644_v25, %v745_v61 }
 0x140   : > { %749 = vst.msk [vmem:[%s172_s24] sm:$0x3] %vm748_vm3, %v747_v33 }
 0x141   : > { %1058 = shalt.err (!%p1055_p3)
}
 0x142   : > { %s1059_s30 = scalar_lea.hbm %s1501_s28, 32  ;;  %s1063_s10 = scalar_lea.hbm %s1546_s3, 64 }
 0x143   : > { %p1060_p4 = scmp.ne.s32.totalorder %s1501_s28, %s1059_s30  ;;  %p1064_p9 = scmp.lt.u32.totalorder %s1501_s28, %s1546_s3 }
 0x144   : > { %p1065_p10 = scmp.lt.u32.totalorder %s1063_s10, %s1059_s30  ;;  %p1067_p12 = scmp.lt.u32.totalorder %s1059_s30, %s1501_s28 }
 0x145   : > { %p1061_p7 = pnand %p1060_p4, %p1165_p5 }
 0x146   : > { %p1066_p11 = por %p1065_p10, %p1064_p9 }
 0x147   : > { %p1062_p8 = pneg %p1061_p7 }
 0x148   : > { %p1068_p13 = por %p1067_p12, %p1066_p11 }
 0x14a   : > { %p1069_p0 = pnand %p1068_p13, %p1062_p8 }
 0x14c   : > { %1072 = shalt.err (!%p1069_p0)
}
 0x14d   : > { %1006 = dma.vmem_to_hbm [thread:$0]  (%p1165_p5), %s1503_s25, 32, %s1501_s28, %s756_s29  }
 0x14e PF: > { %p1012_p1 = scmp.ge.s32.totalorder %s1107_s15, 2  ;;  %s793_s17 = sand.u32 1, %s1095_s12  }
 0x14f   : > { %s794_s19 = scalar_lea.sflag [#allocation3], %s793_s17 }
 0x150   : > { %p1009_p2 = pnand %p1012_p1, %p1169_p6 }
 0x152   : > { %1090 = dma.done.wait (!%p1009_p2), %s794_s19, 32  }
 0x153   : > { %1092 = vsyncadd (!%p1009_p2), %s794_s19, 4294967264  ;;  %p14_p3 = scmp.ge.s32.totalorder %s1153_s18, 4   ;;  %s1549_s12 = smov %s1099_s13 }
 0x154   : > { %s1550_s13 = smov %s1103_s14  ;;  %s1551_s14 = smov %s1163_s21 }
 0x155   : > { %s1552_s15 = smov %s1153_s18  ;;  %16 = sbr.rel (!%p14_p3) target bundleno = 3 (0x3), region = 75 }
 0x15c   :  { %799 = vsyncpa [#allocation3], 1 }
 0x15d   :  { %801 = vsyncpa [#allocation3 + $0x1], 1 }

</bundles_post_ra>
